<compile_context>
chip_gen: v7x
topology: tpu7x:2x2x1
jax: 0.10.0
libtpu: 0.0.40
codegen_flags: <defaults>
</compile_context>

<pallas_src>
import functools

import jax
import jax.numpy as jnp
from jax import lax
from jax.experimental import pallas as pl
from jax.experimental.pallas import tpu as pltpu

LANE = 128


def _min_block_rows(dtype):
    """Minimum sublane extent of a (rows, 128) block for this dtype."""
    return 8 * max(1, 4 // jnp.dtype(dtype).itemsize)   # 8 f32, 16 bf16, 32 int8


def _focal_kernel(x_ref, t_ref, out_ref, *, gamma, n_valid, tile_rows,
                  sub_rows, mask_tail, binary_targets):
    """One grid step: reduce a (tile_rows, 128) block to an (8, 128) partial sum."""
    n_sub = tile_rows // sub_rows

    def block_partial(masked):
        row0 = pl.program_id(0) * tile_rows

        def chunk(s, acc):
            r0 = pl.multiple_of(s * sub_rows, sub_rows)
            x = x_ref[pl.ds(r0, sub_rows), :].astype(jnp.float32)
            t = t_ref[pl.ds(r0, sub_rows), :].astype(jnp.float32)

            # Numerically-stable BCE with logits (reduction='none'):
            #   bce = max(x, 0) - x*t + log1p(exp(-|x|))
            e = jnp.exp(-jnp.abs(x))
            bce = jnp.maximum(x, 0.0) - x * t + jnp.log1p(e)

            if binary_targets:
                # For t in {0,1}:  pt == sigmoid(x) if t==1 else 1-sigmoid(x),
                # which equals exp(-bce) exactly.  Reuses e = exp(-|x|) and a
                # reciprocal instead of a second full exp (EUP: 3 -> 2 transc.).
                p = jnp.where(x >= 0.0, 1.0, e) / (1.0 + e)   # sigmoid(x), stable
                one_m_pt = jnp.where(t >= 0.5, 1.0 - p, p)
            else:
                one_m_pt = 1.0 - jnp.exp(-bce)                # soft-label path

            # Integer gamma -> explicit repeated multiply (no exp(g*log(.))).
            if float(gamma) == float(int(gamma)):
                w = lax.integer_pow(one_m_pt, int(gamma))
            else:
                w = one_m_pt ** jnp.float32(gamma)
            focal = w * bce   # alpha and 1/N are applied in the wrapper

            if masked:
                # Only compiled into the last-block branch: mask padded / OOB
                # elements of the ragged tail.
                rid = lax.broadcasted_iota(jnp.int32, focal.shape, 0)
                cid = lax.broadcasted_iota(jnp.int32, focal.shape, 1)
                gidx = (row0 + r0 + rid) * LANE + cid
                focal = jnp.where(gidx < n_valid, focal, 0.0)

            # VPU-only partial reduction into an (8, 128) vreg-shaped tile.
            return acc + jnp.sum(focal.reshape(sub_rows // 8, 8, LANE), axis=0)

        return lax.fori_loop(0, n_sub, chunk,
                             jnp.zeros((8, LANE), jnp.float32))

    if mask_tail:
        is_last = pl.program_id(0) == pl.num_programs(0) - 1

        @pl.when(jnp.logical_not(is_last))
        def _():
            out_ref[...] = block_partial(False)

        @pl.when(is_last)
        def _():
            out_ref[...] = block_partial(True)
    else:
        out_ref[...] = block_partial(False)


def focal_loss_pallas(inputs, targets, alpha=1.0, gamma=2.0, *,
                      tile_rows=8192, sub_rows=512, binary_targets=True):
    """Mean focal loss over all elements of `inputs`/`targets` (any shape).

    binary_targets=True enables the exact fast path for {0,1} labels (bf16
    target transport + reciprocal-based pt).  Pass binary_targets=False if
    targets may contain soft labels.
    """
    assert inputs.shape == targets.shape
    n_valid = int(inputs.size)
    assert n_valid > 0

    x = jnp.ravel(inputs)
    t = jnp.ravel(targets)

    rows_exact = pl.cdiv(n_valid, LANE)

    # bf16 targets are exact for {0,1} labels and halve target HBM traffic
    # (largest relative win on HBM-bound v5e/v6e).
    if binary_targets and rows_exact >= 16 and t.dtype != jnp.bfloat16:
        t = t.astype(jnp.bfloat16)

    row_align = max(_min_block_rows(x.dtype), _min_block_rows(t.dtype))
    if sub_rows % row_align:
        sub_rows = pl.cdiv(sub_rows, row_align) * row_align

    # Lane-dense (rows, 128) slab.  Padding only happens when the element
    # count is not 128-aligned (or the array is smaller than one min tile).
    rows_arr = max(rows_exact, row_align)
    pad = rows_arr * LANE - n_valid
    if pad:
        x = jnp.pad(x, (0, pad))
        t = jnp.pad(t, (0, pad))
    x = x.reshape(rows_arr, LANE)
    t = t.reshape(rows_arr, LANE)

    # Block rows: as large as possible for DMA amortisation, but never a
    # single block when >=2 aligned blocks fit, so the parallel grid axis can
    # be sharded across v7x's two TensorCores.
    tr = int(tile_rows)
    if rows_arr >= 2 * row_align:
        half = pl.cdiv(pl.cdiv(rows_arr, 2), row_align) * row_align
        tr = min(tr, half)
    tr = min(tr, max(row_align, (rows_arr // row_align) * row_align))
    tr = max(row_align, (tr // row_align) * row_align)
    if tr >= sub_rows:
        tr = (tr // sub_rows) * sub_rows   # inner chunking divides the block
        sub = sub_rows
    else:
        sub = tr

    num_blocks = pl.cdiv(rows_arr, tr)
    mask_tail = n_valid < num_blocks * tr * LANE   # static: any padding / OOB?

    kernel = functools.partial(
        _focal_kernel,
        gamma=float(gamma),
        n_valid=n_valid,
        tile_rows=tr,
        sub_rows=sub,
        mask_tail=bool(mask_tail),
        binary_targets=bool(binary_targets),
    )

    partials = pl.pallas_call(
        kernel,
        out_shape=jax.ShapeDtypeStruct((num_blocks * 8, LANE), jnp.float32),
        grid_spec=pltpu.PrefetchScalarGridSpec(
            num_scalar_prefetch=0,
            grid=(num_blocks,),
            in_specs=[
                pl.BlockSpec((tr, LANE), lambda i: (i, 0)),
                pl.BlockSpec((tr, LANE), lambda i: (i, 0)),
            ],
            out_specs=pl.BlockSpec((8, LANE), lambda i: (i, 0)),
        ),
        compiler_params=pltpu.CompilerParams(
            dimension_semantics=("parallel",),       # shard blocks over 2 TCs on v7x
            vmem_limit_bytes=64 * 1024 * 1024,       # explicit limit, not the scoped default
        ),
    )(x, t)

    # Tiny final reduction; alpha and the 1/N mean factor hoisted out of the kernel.
    return jnp.sum(partials) * jnp.float32(float(alpha) / n_valid)


def focal_loss_ref(inputs, targets, alpha=1.0, gamma=2.0):
    x = inputs.astype(jnp.float32)
    t = targets.astype(jnp.float32)
    bce = jnp.maximum(x, 0.0) - x * t + jnp.log1p(jnp.exp(-jnp.abs(x)))
    pt = jnp.exp(-bce)
    return jnp.mean(alpha * (1.0 - pt) ** gamma * bce)


if __name__ == "__main__":
    key = jax.random.PRNGKey(0)
    k1, k2 = jax.random.split(key)
    # Small segmentation-style NCHW logits + binary masks.
    x = jax.random.normal(k1, (2, 4, 16, 16), dtype=jnp.float32)
    targets = (jax.random.uniform(k2, (2, 4, 16, 16)) > 0.5).astype(jnp.float32)

    out = focal_loss_pallas(x, targets, alpha=1.0, gamma=2.0)
    out = jax.block_until_ready(out)

    ref = focal_loss_ref(x, targets, alpha=1.0, gamma=2.0)
    assert jnp.allclose(out, ref, rtol=2e-5, atol=1e-6), (out, ref)
    print("KERNEL_OK")
</pallas_src>

<mosaic_0001>
module attributes {stable_mosaic.version = 11 : i64} {
  func.func @_focal_kernel(%arg0: i32, %arg1: memref<16x128xf32, #tpu.memory_space<vmem>>, %arg2: memref<16x128xbf16, #tpu.memory_space<vmem>>, %arg3: memref<8x128xf32, #tpu.memory_space<vmem>>) attributes {dimension_semantics = [#tpu.dimension_semantics<parallel>], iteration_bounds = array<i64: 1>, scalar_prefetch = 0 : i64, scratch_operands = 0 : i64, tpu.core_type = #tpu.core_type<tc>, window_params = [{transform_indices = @transform_0, window_bounds = array<i64: 16, 128>}, {transform_indices = @transform_1, window_bounds = array<i64: 16, 128>}, {transform_indices = @transform_2, window_bounds = array<i64: 8, 128>}]} {
    %cst = arith.constant 0.000000e+00 : f32
    %0 = vector.broadcast %cst : f32 to vector<8x128xf32>
    %c0_i32 = arith.constant 0 : i32
    %c16_i32 = arith.constant 16 : i32
    %1 = arith.muli %c0_i32, %c16_i32 : i32
    %2 = tpu.assume_multiple %1, 16 : i32
    %3 = arith.index_cast %2 : i32 to index
    %c0 = arith.constant 0 : index
    %4 = vector.load %arg1[%3, %c0] : memref<16x128xf32, #tpu.memory_space<vmem>>, vector<16x128xf32>
    %5 = arith.index_cast %2 : i32 to index
    %c0_0 = arith.constant 0 : index
    %6 = vector.load %arg2[%5, %c0_0] : memref<16x128xbf16, #tpu.memory_space<vmem>>, vector<16x128xbf16>
    %7 = arith.extf %6 : vector<16x128xbf16> to vector<16x128xf32>
    %8 = math.absf %4 : vector<16x128xf32>
    %cst_1 = arith.constant 0.000000e+00 : f32
    %9 = vector.broadcast %cst_1 : f32 to vector<16x128xf32>
    %10 = arith.subf %9, %8 : vector<16x128xf32>
    %11 = math.exp %10 : vector<16x128xf32>
    %cst_2 = arith.constant 0.000000e+00 : f32
    %12 = vector.broadcast %cst_2 : f32 to vector<16x128xf32>
    %13 = arith.maximumf %4, %12 : vector<16x128xf32>
    %14 = arith.mulf %4, %7 : vector<16x128xf32>
    %15 = arith.subf %13, %14 : vector<16x128xf32>
    %16 = math.log1p %11 : vector<16x128xf32>
    %17 = arith.addf %15, %16 : vector<16x128xf32>
    %cst_3 = arith.constant 0.000000e+00 : f32
    %18 = vector.broadcast %cst_3 : f32 to vector<16x128xf32>
    %19 = arith.cmpf oge, %4, %18 : vector<16x128xf32>
    %cst_4 = arith.constant 1.000000e+00 : f32
    %20 = vector.broadcast %cst_4 : f32 to vector<16x128xf32>
    %21 = arith.select %19, %20, %11 : vector<16x128xi1>, vector<16x128xf32>
    %cst_5 = arith.constant 1.000000e+00 : f32
    %22 = vector.broadcast %cst_5 : f32 to vector<16x128xf32>
    %23 = arith.addf %22, %11 : vector<16x128xf32>
    %24 = arith.divf %21, %23 : vector<16x128xf32>
    %cst_6 = arith.constant 5.000000e-01 : f32
    %25 = vector.broadcast %cst_6 : f32 to vector<16x128xf32>
    %26 = arith.cmpf oge, %7, %25 : vector<16x128xf32>
    %cst_7 = arith.constant 1.000000e+00 : f32
    %27 = vector.broadcast %cst_7 : f32 to vector<16x128xf32>
    %28 = arith.subf %27, %24 : vector<16x128xf32>
    %29 = arith.select %26, %28, %24 : vector<16x128xi1>, vector<16x128xf32>
    %30 = arith.mulf %29, %29 : vector<16x128xf32>
    %31 = arith.mulf %30, %17 : vector<16x128xf32>
    %32 = vector.shape_cast %31 : vector<16x128xf32> to vector<2x8x128xf32>
    %cst_8 = arith.constant dense<0.000000e+00> : vector<8x128xf32>
    %33 = vector.multi_reduction <add>, %32, %cst_8 [0] : vector<2x8x128xf32> to vector<8x128xf32>
    %34 = arith.addf %0, %33 : vector<8x128xf32>
    %c1_i32 = arith.constant 1 : i32
    %c0_9 = arith.constant 0 : index
    %c0_10 = arith.constant 0 : index
    %35 = vector.load %arg3[%c0_9, %c0_10] : memref<8x128xf32, #tpu.memory_space<vmem>>, vector<8x128xf32>
    tpu.vector_store %arg3[%c0_9, %c0_10], %34 {strides = array<i32>} : memref<8x128xf32, #tpu.memory_space<vmem>>, vector<8x128xf32>,
    return
  }
  func.func @transform_0(%arg0: i32) -> (i32, i32) {
    %c0_i32 = arith.constant 0 : i32
    %c0_i32_0 = arith.constant 0 : i32
    return %arg0, %c0_i32 : i32, i32
  }
  func.func @transform_1(%arg0: i32) -> (i32, i32) {
    %c0_i32 = arith.constant 0 : i32
    %c0_i32_0 = arith.constant 0 : i32
    return %arg0, %c0_i32 : i32, i32
  }
  func.func @transform_2(%arg0: i32) -> (i32, i32) {
    %c0_i32 = arith.constant 0 : i32
    %c0_i32_0 = arith.constant 0 : i32
    return %arg0, %c0_i32 : i32, i32
  }
}

</mosaic_0001>

<bundles_post_ra>
// kernel: tpu_custom_call.1
= control target key start
LH: loop header
LB: loop body
LE: loop exit
PB: predicated region body
PF: predicated region fallthrough
CT: control target
= control target key end

     0   :  { %7 = vsyncpa [#allocation3], 0  ;;  %s284_s0 = inlined_call_operand.hbm [shape: f32[16,128], index: 0, kind: input, shape index: {}]   ;;  %s285_s1 = inlined_call_operand.hbm [shape: bf16[16,128], index: 1, kind: input, shape index: {}]   ;;  %s286_s2 = inlined_call_operand.hbm [shape: f32[8,128], index: 2, kind: output, shape index: {}]  }
   0x1   :  { %8 = vsyncpa [#allocation6], 0 }
   0x2   :  { %9 = vsyncpa [#allocation4], 0  ;;  %s214_s9 = smov [#allocation2]   ;;  %s142_s13 = scalar_lea.hbm %s284_s0, 256 }
   0x3   :  { %s15_s10 = sshll.u32 %s214_s9, 4  ;;  %p143_p0 = scmp.ne.s32.totalorder %s284_s0, %s142_s13  ;;  %s16_s10 = int_to_ptr.vmem [resolvable:$true] %s15_s10 }
   0x4   :  { %p146_p1 = scmp.lt.u32.totalorder %s142_s13, %s284_s0 }
   0x6   :  { %p148_p2 = pnand %p146_p1, %p143_p0 }
   0x8   :  { %151 = shalt.err (!%p148_p2)
}
   0x9   :  { %s152_s18 = scalar_lea.vmem %s16_s10, 256  ;;  %p157_p4 = scmp.lt.s32.totalorder %s16_s10, %s16_s10 }
   0xa   :  { %p153_p3 = scmp.ne.s32.totalorder %s16_s10, %s152_s18  ;;  %p158_p5 = scmp.lt.s32.totalorder %s152_s18, %s152_s18 }
   0xc   :  { %p159_p6 = por %p158_p5, %p157_p4 }
   0xe   :  { %p160_p7 = pnand %p159_p6, %p153_p3 }
  0x10   :  { %163 = shalt.err (!%p160_p7)
}
  0x11   :  { %s215_s19 = smov 128   ;;  %s216_s20 = smov 8  }
  0x12   :  { %21 = dma.hbm_to_vmem [thread:$0]  %s284_s0, 256, %s16_s10, [#allocation3], %s215_s19, %s215_s19, %s216_s20  }
  0x13   :  { %s217_s23 = smov [#allocation5]   ;;  %s164_s27 = scalar_lea.hbm %s285_s1, 128 }
  0x14   :  { %s27_s24 = sshll.u32 %s217_s23, 4  ;;  %p165_p8 = scmp.ne.s32.totalorder %s285_s1, %s164_s27  ;;  %s28_s24 = int_to_ptr.vmem [resolvable:$true] %s27_s24 }
  0x15   :  { %p168_p9 = scmp.lt.u32.totalorder %s164_s27, %s285_s1 }
  0x17   :  { %p170_p10 = pnand %p168_p9, %p165_p8 }
  0x19   :  { %173 = shalt.err (!%p170_p10)
}
  0x1a   :  { %s174_s4 = scalar_lea.vmem %s28_s24, 128  ;;  %p179_p12 = scmp.lt.s32.totalorder %s28_s24, %s28_s24 }
  0x1b   :  { %p175_p11 = scmp.ne.s32.totalorder %s28_s24, %s174_s4  ;;  %p180_p13 = scmp.lt.s32.totalorder %s174_s4, %s174_s4 }
  0x1d   :  { %p181_p0 = por %p180_p13, %p179_p12 }
  0x1f   :  { %p182_p1 = pnand %p181_p0, %p175_p11 }
  0x21   :  { %185 = shalt.err (!%p182_p1)
}
  0x22   :  { %s218_s0 = smov 64   ;;  %s219_s5 = smov 4  }
  0x23   :  { %33 = dma.hbm_to_vmem [thread:$0]  %s285_s1, 128, %s28_s24, [#allocation6], %s218_s0, %s218_s0, %s219_s5  }
  0x24   :  { %208 = dma.done.wait [#allocation3], 256  }
  0x25   :  { %209 = vsyncadd [#allocation3], 4294967040 }
  0x26   :  { %210 = dma.done.wait [#allocation6], 128  }
  0x27   :  { %211 = vsyncadd [#allocation6], 4294967168  ;;  %v40_v0 = vld [vmem:[#allocation2] sm:$0xff]  ;;  %v41_v1 = vld [vmem:[#allocation2 + $0x8] sm:$0xff]  ;;  %s220_s1 = smov [#allocation7]  }
  0x28   :  { %v46_v2 = vand.u32 2147483647, %v40_v0  ;;  %v47_v3 = vand.u32 2147483647, %v41_v1  ;;  %v120_v12 = vld [vmem:[#allocation5] sm:$0xff]   ;;  %vm80_vm0 = vcmp.ge.f32.partialorder %v40_v0, 0.0 }
  0x29   :  { %v121_v15 = vunpack.c.l.bf16 %v120_v12  ;;  %v122_v16 = vunpack.c.h.bf16 %v120_v12  ;;  %v54_v21 = vmax.f32 %v40_v0, 0.0  ;;  %vm81_vm1 = vcmp.ge.f32.partialorder %v41_v1, 0.0  ;;  %s109_s8 = sshll.u32 %s220_s1, 4  ;;  %s110_s8 = int_to_ptr.vmem [resolvable:$true] %s109_s8 }
  0x2a   :  { %v48_v4 = vsub.f32 0.0, %v46_v2  ;;  %v49_v5 = vsub.f32 0.0, %v47_v3  ;;  %v55_v23 = vmax.f32 %v41_v1, 0.0  ;;  %s186_s9 = scalar_lea.vmem %s110_s8, 128  ;;  %p191_p3 = scmp.lt.s32.totalorder %s110_s8, %s110_s8 }
  0x2b   :  { %v56_v22 = vmul.f32 %v121_v15, %v40_v0  ;;  %v57_v24 = vmul.f32 %v122_v16, %v41_v1  ;;  %vm90_vm4 = vcmp.ge.f32.partialorder %v121_v15, 0.5  ;;  %vm91_vm5 = vcmp.ge.f32.partialorder %v122_v16, 0.5  ;;  %p187_p2 = scmp.ne.s32.totalorder %s110_s8, %s186_s9  ;;  %p192_p4 = scmp.lt.s32.totalorder %s186_s9, %s186_s9 }
  0x2c   :  { %v50_v6 = vmul.f32 1.442695, %v48_v4  ;;  %v52_v7 = vmul.f32 1.442695, %v49_v5 }
  0x2d   :  { %v58_v35 = vsub.f32 %v54_v21, %v56_v22  ;;  %v59_v38 = vsub.f32 %v55_v23, %v57_v24  ;;  %p193_p5 = por %p192_p4, %p191_p3 }
  0x2e   :  { %130 = vpow2.f32 %v50_v6 }
  0x2f   :  { %132 = vpow2.f32 %v52_v7  ;;  %p194_p6 = pnand %p193_p5, %p187_p2 }
  0x38   :  { %v131_v8 = vpop.eup %130 }
  0x39   :  { %v133_v9 = vpop.eup %132  ;;  %v60_v10 = vadd.f32 1.0, %v131_v8  ;;  %v63_v13 = vmul.f32 -0.5, %v131_v8  ;;  %v66_v18 = vand.u32 2147483647, %v131_v8  ;;  %v82_v29 = vsel %vm80_vm0, 1.0, %v131_v8 }
  0x3a   :  { %v69_v11 = vadd.f32 1.0, %v133_v9  ;;  %v72_v14 = vmul.f32 -0.5, %v133_v9  ;;  %v75_v20 = vand.u32 2147483647, %v133_v9  ;;  %v83_v33 = vsel %vm81_vm1, 1.0, %v133_v9 }
  0x3b   :  { %134 = vlog2.f32 %v60_v10  ;;  %v64_v17 = vadd.f32 1.0, %v63_v13  ;;  %vm260_vm2 = vcmp.lt.f32.partialorder %v66_v18, 0.0004427343 }
  0x3c   :  { %136 = vlog2.f32 %v69_v11  ;;  %v73_v19 = vadd.f32 1.0, %v72_v14  ;;  %vm264_vm3 = vcmp.lt.f32.partialorder %v75_v20, 0.0004427343 }
  0x3d   :  { %138 = vrcp.f32 %v60_v10  ;;  %v65_v25 = vmul.f32 %v131_v8, %v64_v17 }
  0x3e   :  { %140 = vrcp.f32 %v69_v11  ;;  %v74_v28 = vmul.f32 %v133_v9, %v73_v19 }
  0x45   :  { %v135_v26 = vpop.eup %134 }
  0x46   :  { %v137_v30 = vpop.eup %136  ;;  %v62_v31 = vmul.f32 0.6931472, %v135_v26 }
  0x47   :  { %v139_v34 = vpop.eup %138  ;;  %v71_v36 = vmul.f32 0.6931472, %v137_v30 }
  0x48   :  { %v141_v37 = vpop.eup %140  ;;  %v68_v39 = vsel %vm260_vm2, %v65_v25, %v62_v31  ;;  %v87_v40 = vmul.f32 %v139_v34, %v82_v29 }
  0x49   :  { %v77_v41 = vsel %vm264_vm3, %v74_v28, %v71_v36  ;;  %v89_v42 = vmul.f32 %v141_v37, %v83_v33  ;;  %v78_v44 = vadd.f32 %v68_v39, %v58_v35 }
  0x4a   :  { %v92_v43 = vsub.f32 1.0, %v87_v40  ;;  %v79_v46 = vadd.f32 %v77_v41, %v59_v38 }
  0x4b   :  { %v93_v45 = vsub.f32 1.0, %v89_v42 }
  0x4c   :  { %v94_v47 = vsel %vm90_vm4, %v92_v43, %v87_v40 }
  0x4d   :  { %v95_v48 = vsel %vm91_vm5, %v93_v45, %v89_v42  ;;  %v96_v49 = vmul.f32 %v94_v47, %v94_v47 }
  0x4e   :  { %v97_v50 = vmul.f32 %v95_v48, %v95_v48 }
  0x4f   :  { %v98_v51 = vmul.f32 %v96_v49, %v78_v44 }
  0x50   :  { %v99_v52 = vmul.f32 %v97_v50, %v79_v46 }
  0x52   :  { %v100_v53 = vadd.f32 %v99_v52, %v98_v51 }
  0x54   :  { %102 = vst [vmem:[#allocation7] sm:$0xff] %v100_v53 }
  0x55   :  { %197 = shalt.err (!%p194_p6)
}
  0x56   :  { %s198_s12 = scalar_lea.hbm %s286_s2, 128 }
  0x57   :  { %p199_p7 = scmp.ne.s32.totalorder %s286_s2, %s198_s12  ;;  %p202_p8 = scmp.lt.u32.totalorder %s198_s12, %s286_s2 }
  0x59   :  { %p204_p9 = pnand %p202_p8, %p199_p7 }
  0x5b   :  { %207 = shalt.err (!%p204_p9)
}
  0x5c   :  { %112 = dma.vmem_to_hbm [thread:$0]  %s110_s8, 128, %s286_s2, [#allocation4]  }
  0x5d   :  { %212 = dma.done.wait [#allocation4], 128  }
  0x5e   :  { %213 = vsyncadd [#allocation4], 4294967168 }
  0x5f   :  { %116 = vsyncpa [#allocation3], 1 }
  0x60   :  { %117 = vsyncpa [#allocation6], 1 }
  0x61   :  { %118 = vsyncpa [#allocation4], 1 }

</bundles_post_ra>
